<compile_context>
chip_gen: v7x
topology: tpu7x:2x2x1
jax: 0.10.0
libtpu: 0.0.40
codegen_flags: <defaults>
</compile_context>

<pallas_src>
import jax
import jax.numpy as jnp
from jax.experimental import pallas as pl
from jax.experimental.pallas import tpu as pltpu


def _round_up(n: int, m: int) -> int:
    return ((n + m - 1) // m) * m


def _cdiv(a: int, b: int) -> int:
    return (a + b - 1) // b


def _device_kind() -> str:
    try:
        return jax.devices()[0].device_kind.lower()
    except Exception:
        return ""


def _maybe_pad2(a, rows, cols):
    r, c = a.shape
    if r == rows and c == cols:
        return a
    return jnp.pad(a, ((0, rows - r), (0, cols - c)))


def _maybe_pad_row(b, cols):
    b = b.reshape(1, -1)
    if b.shape[1] == cols:
        return b
    return jnp.pad(b, ((0, 0), (0, cols - b.shape[1])))


def _vmem_limit_bytes(TB, Dp, Hp, act_bytes, w_bytes, kind):
    xio = 2 * (2 * TB * Dp * act_bytes)            # x & out blocks, double-buffered
    wts = 2 * (Dp * Hp + Hp * Dp) * w_bytes        # weights (upper bound: 2 buffers)
    bias = 2 * (Hp + Dp) * 4
    live = TB * (Hp + Dp) * 4                      # h / y f32 temporaries
    est = int((xio + wts + bias + live) * 3 // 2)  # +50% headroom
    big_vmem = any(v in kind for v in ("v4", "v5", "v6"))
    ceiling = (96 << 20) if big_vmem else (56 << 20)
    return max(32 << 20, min(est, ceiling))


def residual_block_kernel(x_ref, w1_ref, b1_ref, w2_ref, b2_ref, o_ref):
    x = x_ref[...].astype(jnp.float32)                               # (TB, Dp) f32
    # linear1 + relu1 : bf16 (or f32) MXU operands, f32 accumulation.
    h = jnp.dot(x.astype(w1_ref.dtype), w1_ref[...],
                preferred_element_type=jnp.float32)
    h = jnp.maximum(h + b1_ref[...], 0.0)                            # (TB, Hp) f32
    # linear2 + relu2
    y = jnp.dot(h.astype(w2_ref.dtype), w2_ref[...],
                preferred_element_type=jnp.float32)
    y = jnp.maximum(y + b2_ref[...], 0.0)                            # (TB, Dp) f32
    # residual add + relu3 (residual uses the full-precision x)
    o_ref[...] = jnp.maximum(y + x, 0.0).astype(o_ref.dtype)


def residual_block(x, w1, b1, w2, b2, *, block_batch=None, mxu_dtype=jnp.bfloat16):
    """x: (B, input_dim); w1: (input_dim, hidden); b1: (hidden,);
       w2: (hidden, input_dim); b2: (input_dim,).
       Weights are stored pre-transposed ([in, out]) so the kernel does x @ W.
       mxu_dtype=jnp.bfloat16 feeds the MXU's native path (f32 accumulate);
       mxu_dtype=None keeps exact f32 parity with the PyTorch module."""
    B, D = x.shape
    H = w1.shape[1]
    kind = _device_kind()

    # Lane-dense feature dims only when padding is actually needed; 256-wide on
    # v6e/v7x (2x256 MXU), 128 elsewhere.
    lane = 256 if ("v6" in kind or "7" in kind) else 128
    Dp = D if D % 128 == 0 else _round_up(D, lane)
    Hp = H if H % 128 == 0 else _round_up(H, lane)

    # Batch tiling: even tiles, >=2 tiles when B > 8 (keeps both v7x TCs busy),
    # partial last tile instead of batch padding. v5e gets a smaller default.
    if block_batch is None:
        block_batch = 256 if ("v5e" in kind or "v5 lite" in kind) else 512
    if B <= 8:
        TB, n_tiles = B, 1
    else:
        n_tiles = max(_cdiv(B, block_batch), 2)
        TB = _round_up(_cdiv(B, n_tiles), 8)
        n_tiles = _cdiv(B, TB)

    w_dtype = jnp.dtype(mxu_dtype) if mxu_dtype is not None else jnp.dtype(x.dtype)
    x_k = x if Dp == D else jnp.pad(x, ((0, 0), (0, Dp - D)))
    w1_k = _maybe_pad2(w1, Dp, Hp).astype(w_dtype)
    w2_k = _maybe_pad2(w2, Hp, Dp).astype(w_dtype)
    b1_k = _maybe_pad_row(b1, Hp).astype(jnp.float32)
    b2_k = _maybe_pad_row(b2, Dp).astype(jnp.float32)

    vmem_limit = _vmem_limit_bytes(TB, Dp, Hp, jnp.dtype(x.dtype).itemsize,
                                   w_dtype.itemsize, kind)

    def make_call(single_buffer_weights):
        wkw = {}
        if single_buffer_weights:
            # Constant index_map -> DMA'd once; no need for 2 buffers.
            wkw = dict(pipeline_mode=pl.Buffered(1))
        in_specs = [
            pl.BlockSpec((TB, Dp), lambda i: (i, 0)),          # x: batch-tiled
            pl.BlockSpec((Dp, Hp), lambda i: (0, 0), **wkw),   # w1: resident
            pl.BlockSpec((1, Hp), lambda i: (0, 0), **wkw),    # b1: resident
            pl.BlockSpec((Hp, Dp), lambda i: (0, 0), **wkw),   # w2: resident
            pl.BlockSpec((1, Dp), lambda i: (0, 0), **wkw),    # b2: resident
        ]
        return pl.pallas_call(
            residual_block_kernel,
            out_shape=jax.ShapeDtypeStruct((B, Dp), x.dtype),
            grid_spec=pl.GridSpec(
                grid=(n_tiles,),
                in_specs=in_specs,
                out_specs=pl.BlockSpec((TB, Dp), lambda i: (i, 0)),
            ),
            compiler_params=pltpu.CompilerParams(
                # Batch tiles are independent -> shard across TCs on v7x megacore.
                dimension_semantics=("parallel",),
                vmem_limit_bytes=int(vmem_limit),
            ),
        )

    args = (x_k, w1_k, b1_k, w2_k, b2_k)
    try:
        out_p = make_call(True)(*args)
    except Exception:
        # Older JAX may reject pipeline_mode on pallas_call BlockSpecs; fall
        # back to default double-buffering (costs VMEM only, not correctness).
        out_p = make_call(False)(*args)

    return out_p if Dp == D else out_p[:, :D]


def _ref(x, w1, b1, w2, b2):
    h = jnp.maximum(x @ w1 + b1, 0.0)
    y = jnp.maximum(h @ w2 + b2, 0.0)
    return jnp.maximum(y + x, 0.0)


if __name__ == "__main__":
    key = jax.random.PRNGKey(0)
    batch, input_dim, hidden_dim = 8, 32, 64

    kx, k1, kb1, k2, kb2 = jax.random.split(key, 5)
    x = jax.random.normal(kx, (batch, input_dim), dtype=jnp.float32)

    # Deterministic init mimicking nn.Linear's uniform(-1/sqrt(fan_in), 1/sqrt(fan_in)).
    lim1 = 1.0 / jnp.sqrt(input_dim)
    lim2 = 1.0 / jnp.sqrt(hidden_dim)
    w1 = jax.random.uniform(k1, (input_dim, hidden_dim), jnp.float32, -lim1, lim1)
    b1 = jax.random.uniform(kb1, (hidden_dim,), jnp.float32, -lim1, lim1)
    w2 = jax.random.uniform(k2, (hidden_dim, input_dim), jnp.float32, -lim2, lim2)
    b2 = jax.random.uniform(kb2, (input_dim,), jnp.float32, -lim2, lim2)

    expected = _ref(x, w1, b1, w2, b2)

    # Fast path: bf16 MXU operands, f32 accumulation (default).
    out_fast = residual_block(x, w1, b1, w2, b2)
    jax.block_until_ready(out_fast)
    assert out_fast.shape == (batch, input_dim)
    assert jnp.allclose(out_fast, expected, atol=5e-2, rtol=5e-2)

    # Parity path: full f32 matmuls, exact vs PyTorch semantics.
    out_exact = residual_block(x, w1, b1, w2, b2, mxu_dtype=None)
    jax.block_until_ready(out_exact)
    assert out_exact.shape == (batch, input_dim)
    assert jnp.allclose(out_exact, expected, atol=1e-5, rtol=1e-5)

    print("KERNEL_OK")
</pallas_src>

<mosaic_0001>
module attributes {stable_mosaic.version = 11 : i64} {
  func.func @residual_block_kernel(%arg0: i32, %arg1: memref<8x128xf32, #tpu.memory_space<vmem>>, %arg2: memref<128x128xbf16, #tpu.memory_space<vmem>>, %arg3: memref<1x128xf32, #tpu.memory_space<vmem>>, %arg4: memref<128x128xbf16, #tpu.memory_space<vmem>>, %arg5: memref<1x128xf32, #tpu.memory_space<vmem>>, %arg6: memref<8x128xf32, #tpu.memory_space<vmem>>) attributes {dimension_semantics = [#tpu.dimension_semantics<parallel>], iteration_bounds = array<i64: 1>, scalar_prefetch = 0 : i64, scratch_operands = 0 : i64, tpu.core_type = #tpu.core_type<tc>, window_params = [{transform_indices = @transform_0, window_bounds = array<i64: 8, 128>}, {pipeline_mode = #tpu.pipeline_mode<synchronous>, transform_indices = @transform_1, window_bounds = array<i64: 128, 128>}, {pipeline_mode = #tpu.pipeline_mode<synchronous>, transform_indices = @transform_2, window_bounds = array<i64: 1, 128>}, {pipeline_mode = #tpu.pipeline_mode<synchronous>, transform_indices = @transform_3, window_bounds = array<i64: 128, 128>}, {pipeline_mode = #tpu.pipeline_mode<synchronous>, transform_indices = @transform_4, window_bounds = array<i64: 1, 128>}, {transform_indices = @transform_5, window_bounds = array<i64: 8, 128>}]} {
    %c0 = arith.constant 0 : index
    %c0_0 = arith.constant 0 : index
    %0 = vector.load %arg1[%c0, %c0_0] : memref<8x128xf32, #tpu.memory_space<vmem>>, vector<8x128xf32>
    %1 = arith.truncf %0 : vector<8x128xf32> to vector<8x128xbf16>
    %c0_1 = arith.constant 0 : index
    %c0_2 = arith.constant 0 : index
    %2 = vector.load %arg2[%c0_1, %c0_2] : memref<128x128xbf16, #tpu.memory_space<vmem>>, vector<128x128xbf16>
    %cst = arith.constant dense<0.000000e+00> : vector<8x128xf32>
    %3 = tpu.matmul %1, %2, %cst {dimension_numbers = #tpu.dot_dimension_numbers<[1], [0], [0], [1], [0, 0, 1, 1], [], []>} : vector<8x128xbf16>, vector<128x128xbf16>, vector<8x128xf32> -> vector<8x128xf32>
    %c0_3 = arith.constant 0 : index
    %c0_4 = arith.constant 0 : index
    %4 = vector.load %arg3[%c0_3, %c0_4] : memref<1x128xf32, #tpu.memory_space<vmem>>, vector<1x128xf32>
    %5 = vector.broadcast %4 : vector<1x128xf32> to vector<8x128xf32>
    %6 = arith.addf %3, %5 : vector<8x128xf32>
    %cst_5 = arith.constant 0.000000e+00 : f32
    %7 = vector.broadcast %cst_5 : f32 to vector<8x128xf32>
    %8 = arith.maximumf %6, %7 : vector<8x128xf32>
    %9 = arith.truncf %8 : vector<8x128xf32> to vector<8x128xbf16>
    %c0_6 = arith.constant 0 : index
    %c0_7 = arith.constant 0 : index
    %10 = vector.load %arg4[%c0_6, %c0_7] : memref<128x128xbf16, #tpu.memory_space<vmem>>, vector<128x128xbf16>
    %cst_8 = arith.constant dense<0.000000e+00> : vector<8x128xf32>
    %11 = tpu.matmul %9, %10, %cst_8 {dimension_numbers = #tpu.dot_dimension_numbers<[1], [0], [0], [1], [0, 0, 1, 1], [], []>} : vector<8x128xbf16>, vector<128x128xbf16>, vector<8x128xf32> -> vector<8x128xf32>
    %c0_9 = arith.constant 0 : index
    %c0_10 = arith.constant 0 : index
    %12 = vector.load %arg5[%c0_9, %c0_10] : memref<1x128xf32, #tpu.memory_space<vmem>>, vector<1x128xf32>
    %13 = vector.broadcast %12 : vector<1x128xf32> to vector<8x128xf32>
    %14 = arith.addf %11, %13 : vector<8x128xf32>
    %cst_11 = arith.constant 0.000000e+00 : f32
    %15 = vector.broadcast %cst_11 : f32 to vector<8x128xf32>
    %16 = arith.maximumf %14, %15 : vector<8x128xf32>
    %17 = arith.addf %16, %0 : vector<8x128xf32>
    %cst_12 = arith.constant 0.000000e+00 : f32
    %18 = vector.broadcast %cst_12 : f32 to vector<8x128xf32>
    %19 = arith.maximumf %17, %18 : vector<8x128xf32>
    %c0_13 = arith.constant 0 : index
    %c0_14 = arith.constant 0 : index
    %20 = vector.load %arg6[%c0_13, %c0_14] : memref<8x128xf32, #tpu.memory_space<vmem>>, vector<8x128xf32>
    tpu.vector_store %arg6[%c0_13, %c0_14], %19 {strides = array<i32>} : memref<8x128xf32, #tpu.memory_space<vmem>>, vector<8x128xf32>,
    return
  }
  func.func @transform_0(%arg0: i32) -> (i32, i32) {
    %c0_i32 = arith.constant 0 : i32
    %c0_i32_0 = arith.constant 0 : i32
    return %arg0, %c0_i32 : i32, i32
  }
  func.func @transform_1(%arg0: i32) -> (i32, i32) {
    %c0_i32 = arith.constant 0 : i32
    %c0_i32_0 = arith.constant 0 : i32
    %c0_i32_1 = arith.constant 0 : i32
    return %c0_i32, %c0_i32_0 : i32, i32
  }
  func.func @transform_2(%arg0: i32) -> (i32, i32) {
    %c0_i32 = arith.constant 0 : i32
    %c0_i32_0 = arith.constant 0 : i32
    %c0_i32_1 = arith.constant 0 : i32
    return %c0_i32, %c0_i32_0 : i32, i32
  }
  func.func @transform_3(%arg0: i32) -> (i32, i32) {
    %c0_i32 = arith.constant 0 : i32
    %c0_i32_0 = arith.constant 0 : i32
    %c0_i32_1 = arith.constant 0 : i32
    return %c0_i32, %c0_i32_0 : i32, i32
  }
  func.func @transform_4(%arg0: i32) -> (i32, i32) {
    %c0_i32 = arith.constant 0 : i32
    %c0_i32_0 = arith.constant 0 : i32
    %c0_i32_1 = arith.constant 0 : i32
    return %c0_i32, %c0_i32_0 : i32, i32
  }
  func.func @transform_5(%arg0: i32) -> (i32, i32) {
    %c0_i32 = arith.constant 0 : i32
    %c0_i32_0 = arith.constant 0 : i32
    return %arg0, %c0_i32 : i32, i32
  }
}

module attributes {stable_mosaic.version = 11 : i64} {
  func.func @residual_block_kernel(%arg0: i32, %arg1: memref<8x128xf32, #tpu.memory_space<vmem>>, %arg2: memref<128x128xbf16, #tpu.memory_space<vmem>>, %arg3: memref<1x128xf32, #tpu.memory_space<vmem>>, %arg4: memref<128x128xbf16, #tpu.memory_space<vmem>>, %arg5: memref<1x128xf32, #tpu.memory_space<vmem>>, %arg6: memref<8x128xf32, #tpu.memory_space<vmem>>) attributes {dimension_semantics = [#tpu.dimension_semantics<parallel>], iteration_bounds = array<i64: 1>, scalar_prefetch = 0 : i64, scratch_operands = 0 : i64, tpu.core_type = #tpu.core_type<tc>, window_params = [{transform_indices = @transform_0, window_bounds = array<i64: 8, 128>}, {pipeline_mode = #tpu.pipeline_mode<synchronous>, transform_indices = @transform_1, window_bounds = array<i64: 128, 128>}, {pipeline_mode = #tpu.pipeline_mode<synchronous>, transform_indices = @transform_2, window_bounds = array<i64: 1, 128>}, {pipeline_mode = #tpu.pipeline_mode<synchronous>, transform_indices = @transform_3, window_bounds = array<i64: 128, 128>}, {pipeline_mode = #tpu.pipeline_mode<synchronous>, transform_indices = @transform_4, window_bounds = array<i64: 1, 128>}, {transform_indices = @transform_5, window_bounds = array<i64: 8, 128>}]} {
    %c0 = arith.constant 0 : index
    %c0_0 = arith.constant 0 : index
    %0 = vector.load %arg1[%c0, %c0_0] : memref<8x128xf32, #tpu.memory_space<vmem>>, vector<8x128xf32>
    %1 = arith.truncf %0 : vector<8x128xf32> to vector<8x128xbf16>
    %c0_1 = arith.constant 0 : index
    %c0_2 = arith.constant 0 : index
    %2 = vector.load %arg2[%c0_1, %c0_2] : memref<128x128xbf16, #tpu.memory_space<vmem>>, vector<128x128xbf16>
    %cst = arith.constant dense<0.000000e+00> : vector<8x128xf32>
    %3 = tpu.matmul %1, %2, %cst {dimension_numbers = #tpu.dot_dimension_numbers<[1], [0], [0], [1], [0, 0, 1, 1], [], []>} : vector<8x128xbf16>, vector<128x128xbf16>, vector<8x128xf32> -> vector<8x128xf32>
    %c0_3 = arith.constant 0 : index
    %c0_4 = arith.constant 0 : index
    %4 = vector.load %arg3[%c0_3, %c0_4] : memref<1x128xf32, #tpu.memory_space<vmem>>, vector<1x128xf32>
    %5 = vector.broadcast %4 : vector<1x128xf32> to vector<8x128xf32>
    %6 = arith.addf %3, %5 : vector<8x128xf32>
    %cst_5 = arith.constant 0.000000e+00 : f32
    %7 = vector.broadcast %cst_5 : f32 to vector<8x128xf32>
    %8 = arith.maximumf %6, %7 : vector<8x128xf32>
    %9 = arith.truncf %8 : vector<8x128xf32> to vector<8x128xbf16>
    %c0_6 = arith.constant 0 : index
    %c0_7 = arith.constant 0 : index
    %10 = vector.load %arg4[%c0_6, %c0_7] : memref<128x128xbf16, #tpu.memory_space<vmem>>, vector<128x128xbf16>
    %cst_8 = arith.constant dense<0.000000e+00> : vector<8x128xf32>
    %11 = tpu.matmul %9, %10, %cst_8 {dimension_numbers = #tpu.dot_dimension_numbers<[1], [0], [0], [1], [0, 0, 1, 1], [], []>} : vector<8x128xbf16>, vector<128x128xbf16>, vector<8x128xf32> -> vector<8x128xf32>
    %c0_9 = arith.constant 0 : index
    %c0_10 = arith.constant 0 : index
    %12 = vector.load %arg5[%c0_9, %c0_10] : memref<1x128xf32, #tpu.memory_space<vmem>>, vector<1x128xf32>
    %13 = vector.broadcast %12 : vector<1x128xf32> to vector<8x128xf32>
    %14 = arith.addf %11, %13 : vector<8x128xf32>
    %cst_11 = arith.constant 0.000000e+00 : f32
    %15 = vector.broadcast %cst_11 : f32 to vector<8x128xf32>
    %16 = arith.maximumf %14, %15 : vector<8x128xf32>
    %17 = arith.addf %16, %0 : vector<8x128xf32>
    %cst_12 = arith.constant 0.000000e+00 : f32
    %18 = vector.broadcast %cst_12 : f32 to vector<8x128xf32>
    %19 = arith.maximumf %17, %18 : vector<8x128xf32>
    %c0_13 = arith.constant 0 : index
    %c0_14 = arith.constant 0 : index
    %20 = vector.load %arg6[%c0_13, %c0_14] : memref<8x128xf32, #tpu.memory_space<vmem>>, vector<8x128xf32>
    tpu.vector_store %arg6[%c0_13, %c0_14], %19 {strides = array<i32>} : memref<8x128xf32, #tpu.memory_space<vmem>>, vector<8x128xf32>,
    return
  }
  func.func @transform_0(%arg0: i32) -> (i32, i32) {
    %c0_i32 = arith.constant 0 : i32
    %c0_i32_0 = arith.constant 0 : i32
    return %arg0, %c0_i32 : i32, i32
  }
  func.func @transform_1(%arg0: i32) -> (i32, i32) {
    %c0_i32 = arith.constant 0 : i32
    %c0_i32_0 = arith.constant 0 : i32
    %c0_i32_1 = arith.constant 0 : i32
    return %c0_i32, %c0_i32_0 : i32, i32
  }
  func.func @transform_2(%arg0: i32) -> (i32, i32) {
    %c0_i32 = arith.constant 0 : i32
    %c0_i32_0 = arith.constant 0 : i32
    %c0_i32_1 = arith.constant 0 : i32
    return %c0_i32, %c0_i32_0 : i32, i32
  }
  func.func @transform_3(%arg0: i32) -> (i32, i32) {
    %c0_i32 = arith.constant 0 : i32
    %c0_i32_0 = arith.constant 0 : i32
    %c0_i32_1 = arith.constant 0 : i32
    return %c0_i32, %c0_i32_0 : i32, i32
  }
  func.func @transform_4(%arg0: i32) -> (i32, i32) {
    %c0_i32 = arith.constant 0 : i32
    %c0_i32_0 = arith.constant 0 : i32
    %c0_i32_1 = arith.constant 0 : i32
    return %c0_i32, %c0_i32_0 : i32, i32
  }
  func.func @transform_5(%arg0: i32) -> (i32, i32) {
    %c0_i32 = arith.constant 0 : i32
    %c0_i32_0 = arith.constant 0 : i32
    return %arg0, %c0_i32 : i32, i32
  }
}

</mosaic_0001>

<bundles_post_ra>
// kernel: tpu_custom_call.1
= control target key start
LH: loop header
LB: loop body
LE: loop exit
PB: predicated region body
PF: predicated region fallthrough
CT: control target
= control target key end

     0   :  { %10 = vsyncpa [#allocation3], 0  ;;  %s599_s0 = inlined_call_operand.hbm [shape: f32[8,128], index: 0, kind: input, shape index: {}]   ;;  %s600_s1 = inlined_call_operand.hbm [shape: bf16[128,128], index: 1, kind: input, shape index: {}]   ;;  %s601_s2 = inlined_call_operand.vmem [shape: f32[1,128], index: 2, kind: input, shape index: {}]   ;;  %s602_s3 = inlined_call_operand.hbm [shape: bf16[128,128], index: 3, kind: input, shape index: {}]   ;;  %s603_s4 = inlined_call_operand.vmem [shape: f32[1,128], index: 4, kind: input, shape index: {}]   ;;  %s604_s5 = inlined_call_operand.hbm [shape: f32[8,128], index: 5, kind: output, shape index: {}]  }
   0x1   :  { %11 = vsyncpa [#allocation6], 0 }
   0x2   :  { %12 = vsyncpa [#allocation4], 0  ;;  %s501_s18 = smov [#allocation5]   ;;  %s407_s22 = scalar_lea.hbm %s600_s1, 1024 }
   0x3   :  { %s28_s19 = sshll.u32 %s501_s18, 4  ;;  %p408_p0 = scmp.ne.s32.totalorder %s600_s1, %s407_s22  ;;  %s29_s19 = int_to_ptr.vmem [resolvable:$true] %s28_s19 }
   0x4   :  { %p411_p1 = scmp.lt.u32.totalorder %s407_s22, %s600_s1 }
   0x6   :  { %p413_p2 = pnand %p411_p1, %p408_p0 }
   0x8   :  { %416 = shalt.err (!%p413_p2)
}
   0x9   :  { %s417_s27 = scalar_lea.vmem %s29_s19, 1024  ;;  %p422_p4 = scmp.lt.s32.totalorder %s29_s19, %s29_s19 }
   0xa   :  { %p418_p3 = scmp.ne.s32.totalorder %s29_s19, %s417_s27  ;;  %p423_p5 = scmp.lt.s32.totalorder %s417_s27, %s417_s27 }
   0xc   :  { %p424_p6 = por %p423_p5, %p422_p4 }
   0xe   :  { %p425_p7 = pnand %p424_p6, %p418_p3 }
  0x10   :  { %428 = shalt.err (!%p425_p7)
}
  0x11   :  { %s502_s28 = smov 64   ;;  %s503_s29 = smov 4  }
  0x12   :  { %34 = dma.hbm_to_vmem [thread:$0]  %s600_s1, 1024, %s29_s19, [#allocation6], %s502_s28, %s502_s28, %s503_s29  }
  0x13   :  { %s504_s7 = smov [#allocation2]   ;;  %s505_s9 = smov [#allocation7]  }
  0x14   :  { %s19_s8 = sshll.u32 %s504_s7, 4  ;;  %s42_s10 = sshll.u32 %s505_s9, 4  ;;  %s20_s8 = int_to_ptr.vmem [resolvable:$true] %s19_s8  ;;  %s43_s10 = int_to_ptr.vmem [resolvable:$true] %s42_s10 }
  0x15   :  { %s429_s13 = scalar_lea.hbm %s599_s0, 128 }
  0x16   :  { %p430_p8 = scmp.ne.s32.totalorder %s599_s0, %s429_s13  ;;  %p433_p9 = scmp.lt.u32.totalorder %s429_s13, %s599_s0 }
  0x18   :  { %p435_p10 = pnand %p433_p9, %p430_p8 }
  0x1a   :  { %438 = shalt.err (!%p435_p10)
}
  0x1b   :  { %s439_s1 = scalar_lea.vmem %s20_s8, 128  ;;  %p444_p12 = scmp.lt.s32.totalorder %s20_s8, %s20_s8 }
  0x1c   :  { %p440_p11 = scmp.ne.s32.totalorder %s20_s8, %s439_s1  ;;  %p445_p13 = scmp.lt.s32.totalorder %s439_s1, %s439_s1 }
  0x1e   :  { %p446_p0 = por %p445_p13, %p444_p12 }
  0x20   :  { %p447_p1 = pnand %p446_p0, %p440_p11 }
  0x22   :  { %450 = shalt.err (!%p447_p1)
}
  0x23   :  { %22 = dma.hbm_to_vmem [thread:$0]  %s599_s0, 128, %s20_s8, [#allocation3]  }
  0x24   :  { %s451_s22 = scalar_lea.hbm %s602_s3, 1024 }
  0x25   :  { %p452_p2 = scmp.ne.s32.totalorder %s602_s3, %s451_s22  ;;  %p455_p3 = scmp.lt.u32.totalorder %s451_s22, %s602_s3 }
  0x27   :  { %p457_p4 = pnand %p455_p3, %p452_p2 }
  0x29   :  { %460 = shalt.err (!%p457_p4)
}
  0x2a   :  { %s461_s27 = scalar_lea.vmem %s43_s10, 1024  ;;  %p466_p6 = scmp.lt.s32.totalorder %s43_s10, %s43_s10 }
  0x2b   :  { %p462_p5 = scmp.ne.s32.totalorder %s43_s10, %s461_s27  ;;  %p467_p7 = scmp.lt.s32.totalorder %s461_s27, %s461_s27 }
  0x2d   :  { %p468_p8 = por %p467_p7, %p466_p6 }
  0x2f   :  { %p469_p9 = pnand %p468_p8, %p462_p5 }
  0x31   :  { %472 = shalt.err (!%p469_p9)
}
  0x32   :  { %48 = dma.hbm_to_vmem [thread:$0]  %s602_s3, 1024, %s43_s10, [#allocation6], %s502_s28, %s502_s28, %s503_s29  }
  0x33   :  { %495 = dma.done.wait [#allocation3], 128  }
  0x34   :  { %496 = vsyncadd [#allocation3], 4294967168 }
  0x35   :  { %497 = dma.done.wait [#allocation6], 2048  }
  0x36   :  { %498 = vsyncadd [#allocation6], 4294965248  ;;  %v506_v0 = vmov 0.0   ;;  %vm507_vm0 = vmmov 0   ;;  %v391_v1 = vld [vmem:[#allocation5] sm:$0xff]   ;;  %v392_v2 = vld [vmem:[#allocation5 + $0x8] sm:$0xff]  }
  0x37   :  { %343 = vmatprep.subr.bf16.mxu0 %v506_v0  ;;  %359 = vmatprep.mubr.msk.bf16.mxu0 %vm507_vm0, %v506_v0  ;;  %v393_v3 = vld [vmem:[#allocation5 + $0x10] sm:$0xff]   ;;  %v399_v4 = vld [vmem:[#allocation7] sm:$0xff]   ;;  %v394_v5 = vld [vmem:[#allocation5 + $0x18] sm:$0xff]   ;;  %s508_s7 = smov [#allocation8]  }
  0x38   :  { %363 = vmatprep.subr.bf16.mxu1 %v506_v0  ;;  %379 = vmatprep.mubr.msk.bf16.mxu1 %vm507_vm0, %v506_v0  ;;  %v400_v6 = vld [vmem:[#allocation7 + $0x8] sm:$0xff]   ;;  %v395_v7 = vld [vmem:[#allocation5 + $0x20] sm:$0xff]   ;;  %v401_v8 = vld [vmem:[#allocation7 + $0x10] sm:$0xff]  }
  0x39   :  { %344 = vmatpush3.bf16.msra.mxu0 %v391_v1  ;;  %364 = vmatpush3.bf16.msra.mxu1 %v399_v4  ;;  %v396_v9 = vld [vmem:[#allocation5 + $0x28] sm:$0xff]   ;;  %v402_v10 = vld [vmem:[#allocation7 + $0x18] sm:$0xff]   ;;  %v397_v11 = vld [vmem:[#allocation5 + $0x30] sm:$0xff]  }
  0x3a   :  { %345 = vmatprep.subr.bf16.mxu0 %v506_v0  ;;  %365 = vmatprep.subr.bf16.mxu1 %v506_v0  ;;  %v403_v12 = vld [vmem:[#allocation7 + $0x20] sm:$0xff]   ;;  %v398_v13 = vld [vmem:[#allocation5 + $0x38] sm:$0xff]   ;;  %v404_v15 = vld [vmem:[#allocation7 + $0x28] sm:$0xff]  }
  0x3b   :  { %v61_v14 = vld [vmem:[#allocation2] sm:$0xff]  ;;  %v405_v17 = vld [vmem:[#allocation7 + $0x30] sm:$0xff]  }
  0x3c   :  { %v62_v16 = vpack.c.bf16 %v61_v14, %v61_v14  ;;  %v406_v18 = vld [vmem:[#allocation7 + $0x38] sm:$0xff]  }
  0x3d   :  { %346 = vmatpush3.bf16.msra.mxu0 %v392_v2  ;;  %366 = vmatpush3.bf16.msra.mxu1 %v400_v6  ;;  %v307_v19 = vld [vmem:[%s601_s2] ss:$0 sm:$0xff]  ;;  %s297_s2 = sshll.u32 %s508_s7, 4  ;;  %s298_s2 = int_to_ptr.vmem [resolvable:$true] %s297_s2 }
  0x3e   :  { %347 = vmatprep.subr.bf16.mxu0 %v506_v0  ;;  %367 = vmatprep.subr.bf16.mxu1 %v506_v0  ;;  %v316_v27 = vld [vmem:[%s603_s4] ss:$0 sm:$0xff]  ;;  %s473_s8 = scalar_lea.vmem %s298_s2, 128  ;;  %p478_p11 = scmp.lt.s32.totalorder %s298_s2, %s298_s2 }
  0x3f   :  { %p474_p10 = scmp.ne.s32.totalorder %s298_s2, %s473_s8  ;;  %p479_p12 = scmp.lt.s32.totalorder %s473_s8, %s473_s8 }
  0x41   :  { %348 = vmatpush3.bf16.msra.mxu0 %v393_v3  ;;  %368 = vmatpush3.bf16.msra.mxu1 %v401_v8  ;;  %p480_p13 = por %p479_p12, %p478_p11 }
  0x42   :  { %349 = vmatprep.subr.bf16.mxu0 %v506_v0  ;;  %369 = vmatprep.subr.bf16.mxu1 %v506_v0 }
  0x43   :  { %p481_p0 = pnand %p480_p13, %p474_p10 }
  0x45   :  { %350 = vmatpush3.bf16.msra.mxu0 %v394_v5  ;;  %370 = vmatpush3.bf16.msra.mxu1 %v402_v10 }
  0x46   :  { %351 = vmatprep.subr.bf16.mxu0 %v506_v0  ;;  %371 = vmatprep.subr.bf16.mxu1 %v506_v0 }
  0x49   :  { %352 = vmatpush3.bf16.msra.mxu0 %v395_v7  ;;  %372 = vmatpush3.bf16.msra.mxu1 %v403_v12 }
  0x4a   :  { %353 = vmatprep.subr.bf16.mxu0 %v506_v0  ;;  %373 = vmatprep.subr.bf16.mxu1 %v506_v0 }
  0x4d   :  { %354 = vmatpush3.bf16.msra.mxu0 %v396_v9  ;;  %374 = vmatpush3.bf16.msra.mxu1 %v404_v15 }
  0x4e   :  { %355 = vmatprep.subr.bf16.mxu0 %v506_v0  ;;  %375 = vmatprep.subr.bf16.mxu1 %v506_v0 }
  0x51   :  { %356 = vmatpush3.bf16.msra.mxu0 %v397_v11  ;;  %376 = vmatpush3.bf16.msra.mxu1 %v405_v17 }
  0x52   :  { %357 = vmatprep.subr.bf16.mxu0 %v506_v0  ;;  %377 = vmatprep.subr.bf16.mxu1 %v506_v0 }
  0x55   :  { %358 = vmatpush3.bf16.msra.mxu0 %v398_v13  ;;  %378 = vmatpush3.bf16.msra.mxu1 %v406_v18 }
  0x58   :  { %360 = vmatmul.mubr.bf16.vlgmr.msra.gmra.mrb[0].mxu0 %v62_v16 }
 0x12b   :  { %v168_v20 = vpop.f32.mrb[0].mxu0 }
 0x12c   :  { %v169_v21 = vadd.f32 %v307_v19, %v168_v20  ;;  %v361_v22 = vpop.f32.mrb[1].mxu0 }
 0x12d   :  { %v171_v23 = vpop.f32.mrb[2].mxu0 }
 0x12e   :  { %v174_v24 = vmax.f32 %v169_v21, 0.0  ;;  %v362_v25 = vpop.f32.mrb[3].mxu0 }
 0x130   :  { %v175_v26 = vpack.c.bf16 %v174_v24, %v174_v24 }
 0x132   :  { %380 = vmatmul.mubr.bf16.vlgmr.msra.gmra.mrb[0].mxu1 %v175_v26 }
 0x205   :  { %v281_v28 = vpop.f32.mrb[0].mxu1 }
 0x206   :  { %v282_v29 = vadd.f32 %v316_v27, %v281_v28  ;;  %v381_v30 = vpop.f32.mrb[1].mxu1 }
 0x207   :  { %v284_v31 = vpop.f32.mrb[2].mxu1 }
 0x208   :  { %v287_v32 = vmax.f32 %v282_v29, 0.0  ;;  %v382_v33 = vpop.f32.mrb[3].mxu1 }
 0x20a   :  { %v288_v34 = vadd.f32 %v287_v32, %v61_v14 }
 0x20c   :  { %v289_v35 = vmax.f32 %v288_v34, 0.0 }
 0x20e   :  { %290 = vst [vmem:[#allocation8] sm:$0xff] %v289_v35 }
 0x20f   :  { %484 = shalt.err (!%p481_p0)
}
 0x210   :  { %s485_s10 = scalar_lea.hbm %s604_s5, 128 }
 0x211   :  { %p486_p1 = scmp.ne.s32.totalorder %s604_s5, %s485_s10  ;;  %p489_p2 = scmp.lt.u32.totalorder %s485_s10, %s604_s5 }
 0x213   :  { %p491_p3 = pnand %p489_p2, %p486_p1 }
 0x215   :  { %494 = shalt.err (!%p491_p3)
}
 0x216   :  { %300 = dma.vmem_to_hbm [thread:$0]  %s298_s2, 128, %s604_s5, [#allocation4]  }
 0x217   :  { %499 = dma.done.wait [#allocation4], 128  }
 0x218   :  { %500 = vsyncadd [#allocation4], 4294967168 }
 0x219   :  { %304 = vsyncpa [#allocation3], 1 }
 0x21a   :  { %305 = vsyncpa [#allocation6], 1 }
 0x21b   :  { %306 = vsyncpa [#allocation4], 1 }

// kernel: tpu_custom_call.1
= control target key start
LH: loop header
LB: loop body
LE: loop exit
PB: predicated region body
PF: predicated region fallthrough
CT: control target
= control target key end

     0   :  { %10 = vsyncpa [#allocation3], 0  ;;  %s599_s0 = inlined_call_operand.hbm [shape: f32[8,128], index: 0, kind: input, shape index: {}]   ;;  %s600_s1 = inlined_call_operand.hbm [shape: bf16[128,128], index: 1, kind: input, shape index: {}]   ;;  %s601_s2 = inlined_call_operand.vmem [shape: f32[1,128], index: 2, kind: input, shape index: {}]   ;;  %s602_s3 = inlined_call_operand.hbm [shape: bf16[128,128], index: 3, kind: input, shape index: {}]   ;;  %s603_s4 = inlined_call_operand.vmem [shape: f32[1,128], index: 4, kind: input, shape index: {}]   ;;  %s604_s5 = inlined_call_operand.hbm [shape: f32[8,128], index: 5, kind: output, shape index: {}]  }
   0x1   :  { %11 = vsyncpa [#allocation6], 0 }
   0x2   :  { %12 = vsyncpa [#allocation4], 0  ;;  %s501_s18 = smov [#allocation5]   ;;  %s407_s22 = scalar_lea.hbm %s600_s1, 1024 }
   0x3   :  { %s28_s19 = sshll.u32 %s501_s18, 4  ;;  %p408_p0 = scmp.ne.s32.totalorder %s600_s1, %s407_s22  ;;  %s29_s19 = int_to_ptr.vmem [resolvable:$true] %s28_s19 }
   0x4   :  { %p411_p1 = scmp.lt.u32.totalorder %s407_s22, %s600_s1 }
   0x6   :  { %p413_p2 = pnand %p411_p1, %p408_p0 }
   0x8   :  { %416 = shalt.err (!%p413_p2)
}
   0x9   :  { %s417_s27 = scalar_lea.vmem %s29_s19, 1024  ;;  %p422_p4 = scmp.lt.s32.totalorder %s29_s19, %s29_s19 }
   0xa   :  { %p418_p3 = scmp.ne.s32.totalorder %s29_s19, %s417_s27  ;;  %p423_p5 = scmp.lt.s32.totalorder %s417_s27, %s417_s27 }
   0xc   :  { %p424_p6 = por %p423_p5, %p422_p4 }
   0xe   :  { %p425_p7 = pnand %p424_p6, %p418_p3 }
  0x10   :  { %428 = shalt.err (!%p425_p7)
}
  0x11   :  { %s502_s28 = smov 64   ;;  %s503_s29 = smov 4  }
  0x12   :  { %34 = dma.hbm_to_vmem [thread:$0]  %s600_s1, 1024, %s29_s19, [#allocation6], %s502_s28, %s502_s28, %s503_s29  }
  0x13   :  { %s504_s7 = smov [#allocation2]   ;;  %s505_s9 = smov [#allocation7]  }
  0x14   :  { %s19_s8 = sshll.u32 %s504_s7, 4  ;;  %s42_s10 = sshll.u32 %s505_s9, 4  ;;  %s20_s8 = int_to_ptr.vmem [resolvable:$true] %s19_s8  ;;  %s43_s10 = int_to_ptr.vmem [resolvable:$true] %s42_s10 }
  0x15   :  { %s429_s13 = scalar_lea.hbm %s599_s0, 128 }
  0x16   :  { %p430_p8 = scmp.ne.s32.totalorder %s599_s0, %s429_s13  ;;  %p433_p9 = scmp.lt.u32.totalorder %s429_s13, %s599_s0 }
  0x18   :  { %p435_p10 = pnand %p433_p9, %p430_p8 }
  0x1a   :  { %438 = shalt.err (!%p435_p10)
}
  0x1b   :  { %s439_s1 = scalar_lea.vmem %s20_s8, 128  ;;  %p444_p12 = scmp.lt.s32.totalorder %s20_s8, %s20_s8 }
  0x1c   :  { %p440_p11 = scmp.ne.s32.totalorder %s20_s8, %s439_s1  ;;  %p445_p13 = scmp.lt.s32.totalorder %s439_s1, %s439_s1 }
  0x1e   :  { %p446_p0 = por %p445_p13, %p444_p12 }
  0x20   :  { %p447_p1 = pnand %p446_p0, %p440_p11 }
  0x22   :  { %450 = shalt.err (!%p447_p1)
}
  0x23   :  { %22 = dma.hbm_to_vmem [thread:$0]  %s599_s0, 128, %s20_s8, [#allocation3]  }
  0x24   :  { %s451_s22 = scalar_lea.hbm %s602_s3, 1024 }
  0x25   :  { %p452_p2 = scmp.ne.s32.totalorder %s602_s3, %s451_s22  ;;  %p455_p3 = scmp.lt.u32.totalorder %s451_s22, %s602_s3 }
  0x27   :  { %p457_p4 = pnand %p455_p3, %p452_p2 }
  0x29   :  { %460 = shalt.err (!%p457_p4)
}
  0x2a   :  { %s461_s27 = scalar_lea.vmem %s43_s10, 1024  ;;  %p466_p6 = scmp.lt.s32.totalorder %s43_s10, %s43_s10 }
  0x2b   :  { %p462_p5 = scmp.ne.s32.totalorder %s43_s10, %s461_s27  ;;  %p467_p7 = scmp.lt.s32.totalorder %s461_s27, %s461_s27 }
  0x2d   :  { %p468_p8 = por %p467_p7, %p466_p6 }
  0x2f   :  { %p469_p9 = pnand %p468_p8, %p462_p5 }
  0x31   :  { %472 = shalt.err (!%p469_p9)
}
  0x32   :  { %48 = dma.hbm_to_vmem [thread:$0]  %s602_s3, 1024, %s43_s10, [#allocation6], %s502_s28, %s502_s28, %s503_s29  }
  0x33   :  { %495 = dma.done.wait [#allocation3], 128  }
  0x34   :  { %496 = vsyncadd [#allocation3], 4294967168 }
  0x35   :  { %497 = dma.done.wait [#allocation6], 2048  }
  0x36   :  { %498 = vsyncadd [#allocation6], 4294965248  ;;  %v506_v0 = vmov 0.0   ;;  %vm507_vm0 = vmmov 0   ;;  %v391_v1 = vld [vmem:[#allocation5] sm:$0xff]   ;;  %v392_v2 = vld [vmem:[#allocation5 + $0x8] sm:$0xff]  }
  0x37   :  { %343 = vmatprep.subr.bf16.mxu0 %v506_v0  ;;  %359 = vmatprep.mubr.msk.bf16.mxu0 %vm507_vm0, %v506_v0  ;;  %v393_v3 = vld [vmem:[#allocation5 + $0x10] sm:$0xff]   ;;  %v399_v4 = vld [vmem:[#allocation7] sm:$0xff]   ;;  %v394_v5 = vld [vmem:[#allocation5 + $0x18] sm:$0xff]   ;;  %s508_s7 = smov [#allocation8]  }
  0x38   :  { %363 = vmatprep.subr.bf16.mxu1 %v506_v0  ;;  %379 = vmatprep.mubr.msk.bf16.mxu1 %vm507_vm0, %v506_v0  ;;  %v400_v6 = vld [vmem:[#allocation7 + $0x8] sm:$0xff]   ;;  %v395_v7 = vld [vmem:[#allocation5 + $0x20] sm:$0xff]   ;;  %v401_v8 = vld [vmem:[#allocation7 + $0x10] sm:$0xff]  }
  0x39   :  { %344 = vmatpush3.bf16.msra.mxu0 %v391_v1  ;;  %364 = vmatpush3.bf16.msra.mxu1 %v399_v4  ;;  %v396_v9 = vld [vmem:[#allocation5 + $0x28] sm:$0xff]   ;;  %v402_v10 = vld [vmem:[#allocation7 + $0x18] sm:$0xff]   ;;  %v397_v11 = vld [vmem:[#allocation5 + $0x30] sm:$0xff]  }
  0x3a   :  { %345 = vmatprep.subr.bf16.mxu0 %v506_v0  ;;  %365 = vmatprep.subr.bf16.mxu1 %v506_v0  ;;  %v403_v12 = vld [vmem:[#allocation7 + $0x20] sm:$0xff]   ;;  %v398_v13 = vld [vmem:[#allocation5 + $0x38] sm:$0xff]   ;;  %v404_v15 = vld [vmem:[#allocation7 + $0x28] sm:$0xff]  }
  0x3b   :  { %v61_v14 = vld [vmem:[#allocation2] sm:$0xff]  ;;  %v405_v17 = vld [vmem:[#allocation7 + $0x30] sm:$0xff]  }
  0x3c   :  { %v62_v16 = vpack.c.bf16 %v61_v14, %v61_v14  ;;  %v406_v18 = vld [vmem:[#allocation7 + $0x38] sm:$0xff]  }
  0x3d   :  { %346 = vmatpush3.bf16.msra.mxu0 %v392_v2  ;;  %366 = vmatpush3.bf16.msra.mxu1 %v400_v6  ;;  %v307_v19 = vld [vmem:[%s601_s2] ss:$0 sm:$0xff]  ;;  %s297_s2 = sshll.u32 %s508_s7, 4  ;;  %s298_s2 = int_to_ptr.vmem [resolvable:$true] %s297_s2 }
  0x3e   :  { %347 = vmatprep.subr.bf16.mxu0 %v506_v0  ;;  %367 = vmatprep.subr.bf16.mxu1 %v506_v0  ;;  %v316_v27 = vld [vmem:[%s603_s4] ss:$0 sm:$0xff]  ;;  %s473_s8 = scalar_lea.vmem %s298_s2, 128  ;;  %p478_p11 = scmp.lt.s32.totalorder %s298_s2, %s298_s2 }
  0x3f   :  { %p474_p10 = scmp.ne.s32.totalorder %s298_s2, %s473_s8  ;;  %p479_p12 = scmp.lt.s32.totalorder %s473_s8, %s473_s8 }
  0x41   :  { %348 = vmatpush3.bf16.msra.mxu0 %v393_v3  ;;  %368 = vmatpush3.bf16.msra.mxu1 %v401_v8  ;;  %p480_p13 = por %p479_p12, %p478_p11 }
  0x42   :  { %349 = vmatprep.subr.bf16.mxu0 %v506_v0  ;;  %369 = vmatprep.subr.bf16.mxu1 %v506_v0 }
  0x43   :  { %p481_p0 = pnand %p480_p13, %p474_p10 }
  0x45   :  { %350 = vmatpush3.bf16.msra.mxu0 %v394_v5  ;;  %370 = vmatpush3.bf16.msra.mxu1 %v402_v10 }
  0x46   :  { %351 = vmatprep.subr.bf16.mxu0 %v506_v0  ;;  %371 = vmatprep.subr.bf16.mxu1 %v506_v0 }
  0x49   :  { %352 = vmatpush3.bf16.msra.mxu0 %v395_v7  ;;  %372 = vmatpush3.bf16.msra.mxu1 %v403_v12 }
  0x4a   :  { %353 = vmatprep.subr.bf16.mxu0 %v506_v0  ;;  %373 = vmatprep.subr.bf16.mxu1 %v506_v0 }
  0x4d   :  { %354 = vmatpush3.bf16.msra.mxu0 %v396_v9  ;;  %374 = vmatpush3.bf16.msra.mxu1 %v404_v15 }
  0x4e   :  { %355 = vmatprep.subr.bf16.mxu0 %v506_v0  ;;  %375 = vmatprep.subr.bf16.mxu1 %v506_v0 }
  0x51   :  { %356 = vmatpush3.bf16.msra.mxu0 %v397_v11  ;;  %376 = vmatpush3.bf16.msra.mxu1 %v405_v17 }
  0x52   :  { %357 = vmatprep.subr.bf16.mxu0 %v506_v0  ;;  %377 = vmatprep.subr.bf16.mxu1 %v506_v0 }
  0x55   :  { %358 = vmatpush3.bf16.msra.mxu0 %v398_v13  ;;  %378 = vmatpush3.bf16.msra.mxu1 %v406_v18 }
  0x58   :  { %360 = vmatmul.mubr.bf16.vlgmr.msra.gmra.mrb[0].mxu0 %v62_v16 }
 0x12b   :  { %v168_v20 = vpop.f32.mrb[0].mxu0 }
 0x12c   :  { %v169_v21 = vadd.f32 %v307_v19, %v168_v20  ;;  %v361_v22 = vpop.f32.mrb[1].mxu0 }
 0x12d   :  { %v171_v23 = vpop.f32.mrb[2].mxu0 }
 0x12e   :  { %v174_v24 = vmax.f32 %v169_v21, 0.0  ;;  %v362_v25 = vpop.f32.mrb[3].mxu0 }
 0x130   :  { %v175_v26 = vpack.c.bf16 %v174_v24, %v174_v24 }
 0x132   :  { %380 = vmatmul.mubr.bf16.vlgmr.msra.gmra.mrb[0].mxu1 %v175_v26 }
 0x205   :  { %v281_v28 = vpop.f32.mrb[0].mxu1 }
 0x206   :  { %v282_v29 = vadd.f32 %v316_v27, %v281_v28  ;;  %v381_v30 = vpop.f32.mrb[1].mxu1 }
 0x207   :  { %v284_v31 = vpop.f32.mrb[2].mxu1 }
 0x208   :  { %v287_v32 = vmax.f32 %v282_v29, 0.0  ;;  %v382_v33 = vpop.f32.mrb[3].mxu1 }
 0x20a   :  { %v288_v34 = vadd.f32 %v287_v32, %v61_v14 }
 0x20c   :  { %v289_v35 = vmax.f32 %v288_v34, 0.0 }
 0x20e   :  { %290 = vst [vmem:[#allocation8] sm:$0xff] %v289_v35 }
 0x20f   :  { %484 = shalt.err (!%p481_p0)
}
 0x210   :  { %s485_s10 = scalar_lea.hbm %s604_s5, 128 }
 0x211   :  { %p486_p1 = scmp.ne.s32.totalorder %s604_s5, %s485_s10  ;;  %p489_p2 = scmp.lt.u32.totalorder %s485_s10, %s604_s5 }
 0x213   :  { %p491_p3 = pnand %p489_p2, %p486_p1 }
 0x215   :  { %494 = shalt.err (!%p491_p3)
}
 0x216   :  { %300 = dma.vmem_to_hbm [thread:$0]  %s298_s2, 128, %s604_s5, [#allocation4]  }
 0x217   :  { %499 = dma.done.wait [#allocation4], 128  }
 0x218   :  { %500 = vsyncadd [#allocation4], 4294967168 }
 0x219   :  { %304 = vsyncpa [#allocation3], 1 }
 0x21a   :  { %305 = vsyncpa [#allocation6], 1 }
 0x21b   :  { %306 = vsyncpa [#allocation4], 1 }

</bundles_post_ra>
